<compile_context>
chip_gen: v6e
topology: v6e:2x2x1
jax: 0.10.0
libtpu: 0.0.40
codegen_flags: <defaults>
</compile_context>

<pallas_src>
import functools

import jax
import jax.numpy as jnp
from jax.experimental import pallas as pl
from jax.experimental.pallas import tpu as pltpu

LANE = 128
SUBLANE = 8


def _round_up(n, m):
    return ((n + m - 1) // m) * m


def _pad2d(a, rows, cols):
    r, c = a.shape
    return jnp.pad(a, ((0, rows - r), (0, cols - c)))


def _mlp_skip_kernel(x_ref, w1s_ref, b1s_ref, w2_ref, b2_ref, wo_ref, bo_ref,
                     o_ref, *, h1p):
    # x tile (TB, In_p): cast to bf16 for the MXU, accumulate in f32.
    x = x_ref[...].astype(jnp.bfloat16)

    # Fused layer1 + skip: one pass of x through the MXU.
    h = jnp.dot(x, w1s_ref[...], preferred_element_type=jnp.float32) + b1s_ref[...]
    x1 = jnp.maximum(h[:, :h1p], 0.0)          # (TB, H1_p)  -- relu1(layer1(x))
    skip = h[:, h1p:]                          # (TB, H2_p)  -- skip_connection(x)

    # layer2 + relu2
    x2 = jnp.dot(x1.astype(jnp.bfloat16), w2_ref[...],
                 preferred_element_type=jnp.float32) + b2_ref[...]
    x2 = jnp.maximum(x2, 0.0)                  # (TB, H2_p)

    combined = x2 + skip                       # residual add in f32

    # output layer + sigmoid (lane-dense padded output)
    out = jnp.dot(combined.astype(jnp.bfloat16), wo_ref[...],
                  preferred_element_type=jnp.float32) + bo_ref[...]
    o_ref[...] = jax.nn.sigmoid(out)           # (TB, Out_p)


def mlp_with_skip(x, params, *, block_batch=512):
    """x: (B, input_size) f32. params: weights stored (in, out), biases (1, out)."""
    B, in_size = x.shape
    h1 = params["w1"].shape[1]
    h2 = params["w2"].shape[1]
    out_size = params["wo"].shape[1]

    in_p = _round_up(in_size, LANE)
    h1_p = _round_up(h1, LANE)
    h2_p = _round_up(h2, LANE)
    out_p = _round_up(out_size, LANE)

    # Fuse layer1 + skip weights/biases; pad everything to lane width; weights bf16.
    w1s = jnp.concatenate(
        [_pad2d(params["w1"], in_p, h1_p), _pad2d(params["ws"], in_p, h2_p)],
        axis=1).astype(jnp.bfloat16)                            # (In_p, H1_p+H2_p)
    b1s = jnp.concatenate(
        [_pad2d(params["b1"], 1, h1_p), _pad2d(params["bs"], 1, h2_p)], axis=1)
    w2 = _pad2d(params["w2"], h1_p, h2_p).astype(jnp.bfloat16)  # (H1_p, H2_p)
    b2 = _pad2d(params["b2"], 1, h2_p)
    wo = _pad2d(params["wo"], h2_p, out_p).astype(jnp.bfloat16)  # (H2_p, Out_p)
    bo = _pad2d(params["bo"], 1, out_p)

    # Batch tile: large enough for pipelining, clamped to the (padded) batch.
    tb = min(block_batch, _round_up(B, SUBLANE))
    b_pad = _round_up(B, tb)
    x_p = _pad2d(x, b_pad, in_p)

    grid = (b_pad // tb,)
    kernel = functools.partial(_mlp_skip_kernel, h1p=h1_p)

    def resident(shape):
        # weights/biases: same block every grid step -> fetched once, stays in VMEM
        return pl.BlockSpec(shape, lambda i: (0, 0))

    out_padded = pl.pallas_call(
        kernel,
        out_shape=jax.ShapeDtypeStruct((b_pad, out_p), jnp.float32),
        grid=grid,
        in_specs=[
            pl.BlockSpec((tb, in_p), lambda i: (i, 0)),   # x: streamed over batch
            resident((in_p, h1_p + h2_p)),                # fused [w1 | ws]
            resident((1, h1_p + h2_p)),                   # fused [b1 | bs]
            resident((h1_p, h2_p)),                       # w2
            resident((1, h2_p)),                          # b2
            resident((h2_p, out_p)),                      # wo
            resident((1, out_p)),                         # bo
        ],
        out_specs=pl.BlockSpec((tb, out_p), lambda i: (i, 0)),
        compiler_params=pltpu.CompilerParams(
            dimension_semantics=("parallel",),            # v7x: 2 TCs split the grid
            vmem_limit_bytes=32 * 1024 * 1024,            # explicit; safe on v5e/v6e/v7x
        ),
    )(x_p, w1s, b1s, w2, b2, wo, bo)

    return out_padded[:B, :out_size]


def init_params(key, input_size=20, hidden_size1=30, hidden_size2=30, output_size=1):
    """Deterministic synthetic init. Weights stored (in, out); biases (1, out)."""
    ks = jax.random.split(key, 8)

    def linear(kw, kb, fan_in, fan_out):
        bound = 1.0 / jnp.sqrt(jnp.float32(fan_in))
        w = jax.random.uniform(kw, (fan_in, fan_out), jnp.float32, -bound, bound)
        b = jax.random.uniform(kb, (1, fan_out), jnp.float32, -bound, bound)
        return w, b

    w1, b1 = linear(ks[0], ks[1], input_size, hidden_size1)
    w2, b2 = linear(ks[2], ks[3], hidden_size1, hidden_size2)
    ws, bs = linear(ks[4], ks[5], input_size, hidden_size2)
    wo, bo = linear(ks[6], ks[7], hidden_size2, output_size)
    return {"w1": w1, "b1": b1, "w2": w2, "b2": b2,
            "ws": ws, "bs": bs, "wo": wo, "bo": bo}


def reference_forward_f32(x, p):
    x1 = jnp.maximum(x @ p["w1"] + p["b1"], 0.0)
    x2 = jnp.maximum(x1 @ p["w2"] + p["b2"], 0.0)
    skip = x @ p["ws"] + p["bs"]
    return jax.nn.sigmoid((x2 + skip) @ p["wo"] + p["bo"])


def reference_forward_bf16(x, p):
    """Mirrors the kernel's dtype choices exactly (bf16 dots, f32 accumulate/elementwise)."""
    bf = lambda a: a.astype(jnp.bfloat16)
    x1 = jnp.maximum(
        jnp.dot(bf(x), bf(p["w1"]), preferred_element_type=jnp.float32) + p["b1"], 0.0)
    skip = jnp.dot(bf(x), bf(p["ws"]), preferred_element_type=jnp.float32) + p["bs"]
    x2 = jnp.maximum(
        jnp.dot(bf(x1), bf(p["w2"]), preferred_element_type=jnp.float32) + p["b2"], 0.0)
    comb = x2 + skip
    return jax.nn.sigmoid(
        jnp.dot(bf(comb), bf(p["wo"]), preferred_element_type=jnp.float32) + p["bo"])


if __name__ == "__main__":
    key = jax.random.PRNGKey(0)
    kx, kp = jax.random.split(key)

    batch, input_size = 8, 20
    x = jax.random.normal(kx, (batch, input_size), dtype=jnp.float32)
    params = init_params(kp, input_size=input_size,
                         hidden_size1=30, hidden_size2=30, output_size=1)

    out = jax.block_until_ready(mlp_with_skip(x, params))

    ref16 = reference_forward_bf16(x, params)   # dtype-matched reference
    ref32 = reference_forward_f32(x, params)    # exact PyTorch-semantics reference

    assert out.shape == (batch, 1)
    assert jnp.allclose(out, ref16, atol=1e-4, rtol=1e-4), \
        f"kernel vs bf16-matched ref max diff {jnp.max(jnp.abs(out - ref16))}"
    assert jnp.allclose(out, ref32, atol=1e-2, rtol=1e-2), \
        f"kernel vs f32 ref max diff {jnp.max(jnp.abs(out - ref32))}"
    print("KERNEL_OK")
</pallas_src>

<mosaic_0001>
module attributes {stable_mosaic.version = 11 : i64} {
  func.func @_mlp_skip_kernel(%arg0: i32, %arg1: memref<8x128xf32, #tpu.memory_space<vmem>>, %arg2: memref<128x256xbf16, #tpu.memory_space<vmem>>, %arg3: memref<1x256xf32, #tpu.memory_space<vmem>>, %arg4: memref<128x128xbf16, #tpu.memory_space<vmem>>, %arg5: memref<1x128xf32, #tpu.memory_space<vmem>>, %arg6: memref<128x128xbf16, #tpu.memory_space<vmem>>, %arg7: memref<1x128xf32, #tpu.memory_space<vmem>>, %arg8: memref<8x128xf32, #tpu.memory_space<vmem>>) attributes {dimension_semantics = [#tpu.dimension_semantics<parallel>], iteration_bounds = array<i64: 1>, scalar_prefetch = 0 : i64, scratch_operands = 0 : i64, tpu.core_type = #tpu.core_type<tc>, window_params = [{transform_indices = @transform_0, window_bounds = array<i64: 8, 128>}, {pipeline_mode = #tpu.pipeline_mode<synchronous>, transform_indices = @transform_1, window_bounds = array<i64: 128, 256>}, {pipeline_mode = #tpu.pipeline_mode<synchronous>, transform_indices = @transform_2, window_bounds = array<i64: 1, 256>}, {pipeline_mode = #tpu.pipeline_mode<synchronous>, transform_indices = @transform_3, window_bounds = array<i64: 128, 128>}, {pipeline_mode = #tpu.pipeline_mode<synchronous>, transform_indices = @transform_4, window_bounds = array<i64: 1, 128>}, {pipeline_mode = #tpu.pipeline_mode<synchronous>, transform_indices = @transform_5, window_bounds = array<i64: 128, 128>}, {pipeline_mode = #tpu.pipeline_mode<synchronous>, transform_indices = @transform_6, window_bounds = array<i64: 1, 128>}, {transform_indices = @transform_7, window_bounds = array<i64: 8, 128>}]} {
    %c0 = arith.constant 0 : index
    %c0_0 = arith.constant 0 : index
    %0 = vector.load %arg1[%c0, %c0_0] : memref<8x128xf32, #tpu.memory_space<vmem>>, vector<8x128xf32>
    %1 = arith.truncf %0 : vector<8x128xf32> to vector<8x128xbf16>
    %c0_1 = arith.constant 0 : index
    %c0_2 = arith.constant 0 : index
    %2 = vector.load %arg2[%c0_1, %c0_2] : memref<128x256xbf16, #tpu.memory_space<vmem>>, vector<128x256xbf16>
    %cst = arith.constant dense<0.000000e+00> : vector<8x256xf32>
    %3 = tpu.matmul %1, %2, %cst {dimension_numbers = #tpu.dot_dimension_numbers<[1], [0], [0], [1], [0, 0, 1, 1], [], []>} : vector<8x128xbf16>, vector<128x256xbf16>, vector<8x256xf32> -> vector<8x256xf32>
    %c0_3 = arith.constant 0 : index
    %c0_4 = arith.constant 0 : index
    %4 = vector.load %arg3[%c0_3, %c0_4] : memref<1x256xf32, #tpu.memory_space<vmem>>, vector<1x256xf32>
    %5 = vector.broadcast %4 : vector<1x256xf32> to vector<8x256xf32>
    %6 = arith.addf %3, %5 : vector<8x256xf32>
    %7 = vector.extract_strided_slice %6 {offsets = [0, 0], sizes = [8, 128], strides = [1, 1]} : vector<8x256xf32> to vector<8x128xf32>
    %cst_5 = arith.constant 0.000000e+00 : f32
    %8 = vector.broadcast %cst_5 : f32 to vector<8x128xf32>
    %9 = arith.maximumf %7, %8 : vector<8x128xf32>
    %10 = vector.extract_strided_slice %6 {offsets = [0, 128], sizes = [8, 128], strides = [1, 1]} : vector<8x256xf32> to vector<8x128xf32>
    %11 = arith.truncf %9 : vector<8x128xf32> to vector<8x128xbf16>
    %c0_6 = arith.constant 0 : index
    %c0_7 = arith.constant 0 : index
    %12 = vector.load %arg4[%c0_6, %c0_7] : memref<128x128xbf16, #tpu.memory_space<vmem>>, vector<128x128xbf16>
    %cst_8 = arith.constant dense<0.000000e+00> : vector<8x128xf32>
    %13 = tpu.matmul %11, %12, %cst_8 {dimension_numbers = #tpu.dot_dimension_numbers<[1], [0], [0], [1], [0, 0, 1, 1], [], []>} : vector<8x128xbf16>, vector<128x128xbf16>, vector<8x128xf32> -> vector<8x128xf32>
    %c0_9 = arith.constant 0 : index
    %c0_10 = arith.constant 0 : index
    %14 = vector.load %arg5[%c0_9, %c0_10] : memref<1x128xf32, #tpu.memory_space<vmem>>, vector<1x128xf32>
    %15 = vector.broadcast %14 : vector<1x128xf32> to vector<8x128xf32>
    %16 = arith.addf %13, %15 : vector<8x128xf32>
    %cst_11 = arith.constant 0.000000e+00 : f32
    %17 = vector.broadcast %cst_11 : f32 to vector<8x128xf32>
    %18 = arith.maximumf %16, %17 : vector<8x128xf32>
    %19 = arith.addf %18, %10 : vector<8x128xf32>
    %20 = arith.truncf %19 : vector<8x128xf32> to vector<8x128xbf16>
    %c0_12 = arith.constant 0 : index
    %c0_13 = arith.constant 0 : index
    %21 = vector.load %arg6[%c0_12, %c0_13] : memref<128x128xbf16, #tpu.memory_space<vmem>>, vector<128x128xbf16>
    %cst_14 = arith.constant dense<0.000000e+00> : vector<8x128xf32>
    %22 = tpu.matmul %20, %21, %cst_14 {dimension_numbers = #tpu.dot_dimension_numbers<[1], [0], [0], [1], [0, 0, 1, 1], [], []>} : vector<8x128xbf16>, vector<128x128xbf16>, vector<8x128xf32> -> vector<8x128xf32>
    %c0_15 = arith.constant 0 : index
    %c0_16 = arith.constant 0 : index
    %23 = vector.load %arg7[%c0_15, %c0_16] : memref<1x128xf32, #tpu.memory_space<vmem>>, vector<1x128xf32>
    %24 = vector.broadcast %23 : vector<1x128xf32> to vector<8x128xf32>
    %25 = arith.addf %22, %24 : vector<8x128xf32>
    %26 = arith.negf %25 : vector<8x128xf32>
    %27 = math.exp %26 : vector<8x128xf32>
    %cst_17 = arith.constant 1.000000e+00 : f32
    %28 = vector.broadcast %cst_17 : f32 to vector<8x128xf32>
    %29 = arith.addf %28, %27 : vector<8x128xf32>
    %30 = arith.divf %28, %29 : vector<8x128xf32>
    %c0_18 = arith.constant 0 : index
    %c0_19 = arith.constant 0 : index
    %31 = vector.load %arg8[%c0_18, %c0_19] : memref<8x128xf32, #tpu.memory_space<vmem>>, vector<8x128xf32>
    tpu.vector_store %arg8[%c0_18, %c0_19], %30 {strides = array<i32>} : memref<8x128xf32, #tpu.memory_space<vmem>>, vector<8x128xf32>,
    return
  }
  func.func @transform_0(%arg0: i32) -> (i32, i32) {
    %c0_i32 = arith.constant 0 : i32
    %c0_i32_0 = arith.constant 0 : i32
    return %arg0, %c0_i32 : i32, i32
  }
  func.func @transform_1(%arg0: i32) -> (i32, i32) {
    %c0_i32 = arith.constant 0 : i32
    %c0_i32_0 = arith.constant 0 : i32
    %c0_i32_1 = arith.constant 0 : i32
    return %c0_i32, %c0_i32_0 : i32, i32
  }
  func.func @transform_2(%arg0: i32) -> (i32, i32) {
    %c0_i32 = arith.constant 0 : i32
    %c0_i32_0 = arith.constant 0 : i32
    %c0_i32_1 = arith.constant 0 : i32
    return %c0_i32, %c0_i32_0 : i32, i32
  }
  func.func @transform_3(%arg0: i32) -> (i32, i32) {
    %c0_i32 = arith.constant 0 : i32
    %c0_i32_0 = arith.constant 0 : i32
    %c0_i32_1 = arith.constant 0 : i32
    return %c0_i32, %c0_i32_0 : i32, i32
  }
  func.func @transform_4(%arg0: i32) -> (i32, i32) {
    %c0_i32 = arith.constant 0 : i32
    %c0_i32_0 = arith.constant 0 : i32
    %c0_i32_1 = arith.constant 0 : i32
    return %c0_i32, %c0_i32_0 : i32, i32
  }
  func.func @transform_5(%arg0: i32) -> (i32, i32) {
    %c0_i32 = arith.constant 0 : i32
    %c0_i32_0 = arith.constant 0 : i32
    %c0_i32_1 = arith.constant 0 : i32
    return %c0_i32, %c0_i32_0 : i32, i32
  }
  func.func @transform_6(%arg0: i32) -> (i32, i32) {
    %c0_i32 = arith.constant 0 : i32
    %c0_i32_0 = arith.constant 0 : i32
    %c0_i32_1 = arith.constant 0 : i32
    return %c0_i32, %c0_i32_0 : i32, i32
  }
  func.func @transform_7(%arg0: i32) -> (i32, i32) {
    %c0_i32 = arith.constant 0 : i32
    %c0_i32_0 = arith.constant 0 : i32
    return %arg0, %c0_i32 : i32, i32
  }
}

</mosaic_0001>

<bundles_post_ra>
// kernel: tpu_custom_call.1
= control target key start
LH: loop header
LB: loop body
LE: loop exit
PB: predicated region body
PF: predicated region fallthrough
CT: control target
= control target key end

     0   :  { %12 = vsyncpa [#allocation3], 0  ;;  %s834_s0 = inlined_call_operand.hbm [shape: f32[8,128], index: 0, kind: input, shape index: {}]   ;;  %s835_s1 = inlined_call_operand.hbm [shape: bf16[128,256], index: 1, kind: input, shape index: {}]   ;;  %s836_s2 = inlined_call_operand.vmem [shape: f32[1,256], index: 2, kind: input, shape index: {}]   ;;  %s837_s3 = inlined_call_operand.hbm [shape: bf16[128,128], index: 3, kind: input, shape index: {}]   ;;  %s838_s4 = inlined_call_operand.vmem [shape: f32[1,128], index: 4, kind: input, shape index: {}]   ;;  %s839_s5 = inlined_call_operand.hbm [shape: bf16[128,128], index: 5, kind: input, shape index: {}]   ;;  %s840_s6 = inlined_call_operand.vmem [shape: f32[1,128], index: 6, kind: input, shape index: {}]   ;;  %s841_s7 = inlined_call_operand.hbm [shape: f32[8,128], index: 7, kind: output, shape index: {}]  }
   0x1   :  { %13 = vsyncpa [#allocation6], 0 }
   0x2   :  { %14 = vsyncpa [#allocation9], 0 }
   0x3   :  { %15 = vsyncpa [#allocation4], 0  ;;  %s740_s24 = smov [#allocation5]  }
   0x4   :  { %s31_s25 = sshll.u32 %s740_s24, 4  ;;  %s32_s25 = int_to_ptr.vmem [resolvable:$true] %s31_s25 }
   0x5   :  { %s640_s26 = scalar_lea.vmem %s32_s25, 2048  ;;  %p645_p1 = scmp.lt.s32.totalorder %s32_s25, %s32_s25 }
   0x6   :  { %p641_p0 = scmp.ne.s32.totalorder %s32_s25, %s640_s26  ;;  %p646_p2 = scmp.lt.s32.totalorder %s640_s26, %s640_s26 }
   0x8   :  { %p647_p3 = por %p646_p2, %p645_p1 }
   0xa   :  { %p648_p4 = pnand %p647_p3, %p641_p0 }
   0xc   :  { %651 = shalt.err (!%p648_p4)
}
   0xd   :  { %s741_s27 = smov 128   ;;  %s742_s28 = smov 8  }
   0xe   :  { %37 = dma.hbm_to_vmem [thread:$0]  %s835_s1, 2048, %s32_s25, [#allocation6], %s741_s27, %s741_s27, %s742_s28  }
   0xf   :  { %s743_s8 = smov [#allocation2]   ;;  %s744_s10 = smov [#allocation7]  }
  0x10   :  { %s22_s9 = sshll.u32 %s743_s8, 4  ;;  %s45_s11 = sshll.u32 %s744_s10, 4  ;;  %s23_s9 = int_to_ptr.vmem [resolvable:$true] %s22_s9  ;;  %s46_s11 = int_to_ptr.vmem [resolvable:$true] %s45_s11 }
  0x11   :  { %s660_s12 = scalar_lea.vmem %s23_s9, 128  ;;  %p665_p6 = scmp.lt.s32.totalorder %s23_s9, %s23_s9 }
  0x12   :  { %p661_p5 = scmp.ne.s32.totalorder %s23_s9, %s660_s12  ;;  %p666_p7 = scmp.lt.s32.totalorder %s660_s12, %s660_s12 }
  0x14   :  { %p667_p8 = por %p666_p7, %p665_p6 }
  0x16   :  { %p668_p9 = pnand %p667_p8, %p661_p5 }
  0x18   :  { %671 = shalt.err (!%p668_p9)
}
  0x19   :  { %25 = dma.hbm_to_vmem [thread:$0]  %s834_s0, 128, %s23_s9, [#allocation3]  }
  0x1a   :  { %s680_s15 = scalar_lea.vmem %s46_s11, 1024  ;;  %p685_p11 = scmp.lt.s32.totalorder %s46_s11, %s46_s11 }
  0x1b   :  { %p681_p10 = scmp.ne.s32.totalorder %s46_s11, %s680_s15  ;;  %p686_p12 = scmp.lt.s32.totalorder %s680_s15, %s680_s15 }
  0x1d   :  { %p687_p13 = por %p686_p12, %p685_p11 }
  0x1f   :  { %p688_p0 = pnand %p687_p13, %p681_p10 }
  0x21   :  { %691 = shalt.err (!%p688_p0)
}
  0x22   :  { %s745_s1 = smov 64   ;;  %s746_s16 = smov 4  }
  0x23   :  { %51 = dma.hbm_to_vmem [thread:$0]  %s837_s3, 1024, %s46_s11, [#allocation6], %s745_s1, %s745_s1, %s746_s16  }
  0x24   :  { %s747_s19 = smov [#allocation8]  }
  0x25   :  { %s59_s20 = sshll.u32 %s747_s19, 4  ;;  %s60_s20 = int_to_ptr.vmem [resolvable:$true] %s59_s20 }
  0x26   :  { %s700_s21 = scalar_lea.vmem %s60_s20, 1024  ;;  %p705_p2 = scmp.lt.s32.totalorder %s60_s20, %s60_s20 }
  0x27   :  { %p701_p1 = scmp.ne.s32.totalorder %s60_s20, %s700_s21  ;;  %p706_p3 = scmp.lt.s32.totalorder %s700_s21, %s700_s21 }
  0x29   :  { %p707_p4 = por %p706_p3, %p705_p2 }
  0x2b   :  { %p708_p5 = pnand %p707_p4, %p701_p1 }
  0x2d   :  { %711 = shalt.err (!%p708_p5)
}
  0x2e   :  { %65 = dma.hbm_to_vmem [thread:$0]  %s839_s5, 1024, %s60_s20, [#allocation9], %s745_s1, %s745_s1, %s746_s16  }
  0x2f   :  { %732 = dma.done.wait [#allocation3], 128  }
  0x30   :  { %733 = vsyncadd [#allocation3], 4294967168 }
  0x31   :  { %734 = dma.done.wait [#allocation6], 3072  }
  0x32   :  { %735 = vsyncadd [#allocation6], 4294964224 }
  0x33   :  { %736 = dma.done.wait [#allocation9], 1024  }
  0x34   :  { %737 = vsyncadd [#allocation9], 4294966272  ;;  %v748_v0 = vmov 0   ;;  %v749_v1 = vmov 0.0   ;;  %v588_v2 = vld [vmem:[#allocation5 + $0x74] ss:$8 sps:$4 sm:$0xff]   ;;  %v101_v34 = vlaneseq }
  0x35   :  { %223 = vmatprep.mubr.bf16.mxu0 %v748_v0  ;;  %536 = vmatprep.subr.bf16.mxu1 %v749_v1  ;;  %v590_v3 = vld [vmem:[#allocation5 + $0x70] ss:$8 sps:$4 sm:$0xff]   ;;  %v591_v4 = vld [vmem:[#allocation5 + $0x64] ss:$8 sps:$4 sm:$0xff]   ;;  %v593_v5 = vld [vmem:[#allocation5 + $0x60] ss:$8 sps:$4 sm:$0xff]  }
  0x36   :  { %191 = vmatprep.subr.bf16.mxu0 %v588_v2  ;;  %v594_v6 = vld [vmem:[#allocation5 + $0x54] ss:$8 sps:$4 sm:$0xff]   ;;  %v596_v7 = vld [vmem:[#allocation5 + $0x50] ss:$8 sps:$4 sm:$0xff]   ;;  %v597_v8 = vld [vmem:[#allocation5 + $0x44] ss:$8 sps:$4 sm:$0xff]  }
  0x37   :  { %192 = vmatpush1.bf16.msra.mxu0 %v590_v3  ;;  %v599_v9 = vld [vmem:[#allocation5 + $0x40] ss:$8 sps:$4 sm:$0xff]   ;;  %v612_v10 = vld [vmem:[#allocation7 + $0x38] sm:$0xff]   ;;  %v613_v12 = vld [vmem:[#allocation7 + $0x30] sm:$0xff]   ;;  %vm750_vm0 = vmmov 0   ;;  %v102_v35 = vshrl.u32 %v101_v34, 7 }
  0x38   :  { %193 = vmatprep.subr.bf16.mxu0 %v591_v4  ;;  %v600_v11 = vld [vmem:[#allocation5 + $0x34] ss:$8 sps:$4 sm:$0xff]   ;;  %537 = vmatpush3.bf16.msra.mxu1 %v612_v10  ;;  %v602_v13 = vld [vmem:[#allocation5 + $0x30] ss:$8 sps:$4 sm:$0xff]   ;;  %v603_v14 = vld [vmem:[#allocation5 + $0x24] ss:$8 sps:$4 sm:$0xff]  }
  0x39   :  { %538 = vmatprep.subr.bf16.mxu1 %v749_v1  ;;  %v605_v15 = vld [vmem:[#allocation5 + $0x20] ss:$8 sps:$4 sm:$0xff]   ;;  %v606_v17 = vld [vmem:[#allocation5 + $0x14] ss:$8 sps:$4 sm:$0xff]   ;;  %v608_v19 = vld [vmem:[#allocation5 + $0x10] ss:$8 sps:$4 sm:$0xff]   ;;  %552 = vmatprep.mubr.msk.bf16.mxu1 %vm750_vm0, %v749_v1 }
  0x3a   :  { %v614_v16 = vld [vmem:[#allocation7 + $0x28] sm:$0xff]   ;;  %v615_v18 = vld [vmem:[#allocation7 + $0x20] sm:$0xff]   ;;  %v616_v21 = vld [vmem:[#allocation7 + $0x18] sm:$0xff]   ;;  %v103_v36 = vsub.s32 0, %v102_v35  ;;  %v107_v48 = vsub.s32 1, %v102_v35 }
  0x3b   :  { %194 = vmatpush1.bf16.msra.mxu0 %v593_v5  ;;  %v609_v20 = vld [vmem:[#allocation5 + $0x4] ss:$8 sps:$4 sm:$0xff]   ;;  %v611_v22 = vld [vmem:[#allocation5] ss:$8 sps:$4 sm:$0xff]   ;;  %v81_v23 = vld [vmem:[#allocation2] sm:$0xff] }
  0x3c   :  { %195 = vmatprep.subr.bf16.mxu0 %v594_v6  ;;  %539 = vmatpush3.bf16.msra.mxu1 %v613_v12  ;;  %v617_v24 = vld [vmem:[#allocation7 + $0x10] sm:$0xff]   ;;  %v82_v25 = vpack.c.bf16 %v81_v23, %v81_v23  ;;  %v618_v26 = vld [vmem:[#allocation7 + $0x8] sm:$0xff]   ;;  %v619_v27 = vld [vmem:[#allocation7] sm:$0xff]  }
  0x3d   :  { %540 = vmatprep.subr.bf16.mxu1 %v749_v1  ;;  %v620_v28 = vld [vmem:[#allocation8 + $0x38] sm:$0xff]   ;;  %v621_v29 = vld [vmem:[#allocation8 + $0x30] sm:$0xff]   ;;  %v622_v30 = vld [vmem:[#allocation8 + $0x28] sm:$0xff]  }
  0x3e   :  { %v623_v31 = vld [vmem:[#allocation8 + $0x20] sm:$0xff]   ;;  %v624_v32 = vld [vmem:[#allocation8 + $0x18] sm:$0xff]   ;;  %v625_v33 = vld [vmem:[#allocation8 + $0x10] sm:$0xff]  }
  0x3f   :  { %196 = vmatpush1.bf16.msra.mxu0 %v596_v7  ;;  %v99_v37 = vld [vmem:[%s836_s2] sm:$0x3]  ;;  %v626_v46 = vld [vmem:[#allocation8 + $0x8] sm:$0xff]   ;;  %v627_v47 = vld [vmem:[#allocation8] sm:$0xff]  }
  0x40   :  { %197 = vmatprep.subr.bf16.mxu0 %v597_v8  ;;  %541 = vmatpush3.bf16.msra.mxu1 %v614_v16  ;;  %v104_v38 = vrot.slane %v99_v37, %v103_v36  ;;  %v499_v49 = vld [vmem:[%s838_s4] ss:$0 sm:$0xff]  ;;  %v108_v50 = vrot.slane %v99_v37, %v107_v48  ;;  %s751_s4 = smov [#allocation10]  }
  0x41   :  { %542 = vmatprep.subr.bf16.mxu1 %v749_v1  ;;  %v508_v60 = vld [vmem:[%s840_s6] ss:$0 sm:$0xff]  ;;  %s472_s26 = sshll.u32 %s751_s4, 4  ;;  %s473_s26 = int_to_ptr.vmem [resolvable:$true] %s472_s26 }
  0x42   :  { %s712_s27 = scalar_lea.vmem %s473_s26, 128  ;;  %p717_p7 = scmp.lt.s32.totalorder %s473_s26, %s473_s26 }
  0x43   :  { %198 = vmatpush1.bf16.msra.mxu0 %v599_v9  ;;  %p713_p6 = scmp.ne.s32.totalorder %s473_s26, %s712_s27  ;;  %p718_p8 = scmp.lt.s32.totalorder %s712_s27, %s712_s27 }
  0x44   :  { %199 = vmatprep.subr.bf16.mxu0 %v600_v11  ;;  %543 = vmatpush3.bf16.msra.mxu1 %v615_v18 }
  0x45   :  { %544 = vmatprep.subr.bf16.mxu1 %v749_v1  ;;  %p719_p9 = por %p718_p8, %p717_p7 }
  0x47   :  { %200 = vmatpush1.bf16.msra.mxu0 %v602_v13  ;;  %p720_p10 = pnand %p719_p9, %p713_p6 }
  0x48   :  { %201 = vmatprep.subr.bf16.mxu0 %v603_v14  ;;  %545 = vmatpush3.bf16.msra.mxu1 %v616_v21 }
  0x49   :  { %546 = vmatprep.subr.bf16.mxu1 %v749_v1 }
  0x4b   :  { %202 = vmatpush1.bf16.msra.mxu0 %v605_v15 }
  0x4c   :  { %203 = vmatprep.subr.bf16.mxu0 %v606_v17  ;;  %547 = vmatpush3.bf16.msra.mxu1 %v617_v24 }
  0x4d   :  { %548 = vmatprep.subr.bf16.mxu1 %v749_v1 }
  0x4f   :  { %204 = vmatpush1.bf16.msra.mxu0 %v608_v19 }
  0x50   :  { %205 = vmatprep.subr.bf16.mxu0 %v609_v20  ;;  %549 = vmatpush3.bf16.msra.mxu1 %v618_v26 }
  0x51   :  { %550 = vmatprep.subr.bf16.mxu1 %v749_v1 }
  0x53   :  { %206 = vmatpush1.bf16.msra.mxu0 %v611_v22 }
  0x54   :  { %556 = vmatprep.subr.bf16.mxu0 %v749_v1  ;;  %551 = vmatpush3.bf16.msra.mxu1 %v619_v27 }
  0x56   :  { %224 = vmatmul.mubr.bf16.vlgmr.msra.gmra.mxu0 %v82_v25 }
  0x57   :  { %572 = vmatprep.mubr.msk.bf16.mxu0 %vm750_vm0, %v749_v1  ;;  %557 = vmatpush3.bf16.msra.mxu0 %v620_v28 }
  0x58   :  { %558 = vmatprep.subr.bf16.mxu0 %v749_v1 }
  0x5b   :  { %559 = vmatpush3.bf16.msra.mxu0 %v621_v29 }
  0x5c   :  { %560 = vmatprep.subr.bf16.mxu0 %v749_v1 }
  0x5f   :  { %561 = vmatpush3.bf16.msra.mxu0 %v622_v30 }
  0x60   :  { %562 = vmatprep.subr.bf16.mxu0 %v749_v1 }
  0x63   :  { %563 = vmatpush3.bf16.msra.mxu0 %v623_v31 }
  0x64   :  { %564 = vmatprep.subr.bf16.mxu0 %v749_v1 }
  0x67   :  { %565 = vmatpush3.bf16.msra.mxu0 %v624_v32 }
  0x68   :  { %566 = vmatprep.subr.bf16.mxu0 %v749_v1 }
  0x6b   :  { %567 = vmatpush3.bf16.msra.mxu0 %v625_v33 }
  0x6c   :  { %568 = vmatprep.subr.bf16.mxu0 %v749_v1 }
  0x6f   :  { %569 = vmatpush3.bf16.msra.mxu0 %v626_v46 }
  0x70   :  { %570 = vmatprep.subr.bf16.mxu0 %v749_v1 }
  0x73   :  { %571 = vmatpush3.bf16.msra.mxu0 %v627_v47 }
 0x116   :  { %v225_v39 = vpop.f32.mrf.mxu0 }
 0x117   :  { %v226_v40 = vadd.f32 %v225_v39, %v104_v38 }
 0x118   :  { %v227_v41 = vpop.f32.mrf.mxu0 }
 0x119   :  { %v232_v42 = vmax.f32 %v226_v40, 0.0  ;;  %v228_v54 = vadd.f32 %v227_v41, %v108_v50 }
 0x11a   :  { %v229_v43 = vpop.f32.mrf.mxu0 }
 0x11b   :  { %v233_v44 = vpack.c.bf16 %v232_v42, %v232_v42 }
 0x11c   :  { %v230_v45 = vpop.f32.mrf.mxu0 }
 0x11d   :  { %553 = vmatmul.mubr.bf16.vlgmr.msra.gmra.mxu1 %v233_v44 }
 0x1dd   :  { %v339_v51 = vpop.f32.mrf.mxu1 }
 0x1de   :  { %v340_v52 = vadd.f32 %v499_v49, %v339_v51 }
 0x1df   :  { %v554_v53 = vpop.f32.mrf.mxu1 }
 0x1e0   :  { %v345_v55 = vmax.f32 %v340_v52, 0.0 }
 0x1e1   :  { %v342_v56 = vpop.f32.mrf.mxu1 }
 0x1e2   :  { %v346_v57 = vadd.f32 %v345_v55, %v228_v54 }
 0x1e3   :  { %v555_v58 = vpop.f32.mrf.mxu1 }
 0x1e4   :  { %v347_v59 = vpack.c.bf16 %v346_v57, %v346_v57 }
 0x1e6   :  { %573 = vmatmul.mubr.bf16.vlgmr.msra.gmra.mxu0 %v347_v59 }
 0x2a6   :  { %v453_v61 = vpop.f32.mrf.mxu0 }
 0x2a7   :  { %v454_v62 = vadd.f32 %v508_v60, %v453_v61 }
 0x2a8   :  { %v574_v63 = vpop.f32.mrf.mxu0 }
 0x2a9   :  { %v517_v0 = vmul.f32 -1.442695, %v454_v62 }
 0x2aa   :  { %v456_v1 = vpop.f32.mrf.mxu0 }
 0x2ab   :  { %628 = vpow2.f32 %v517_v0 }
 0x2ac   :  { %v575_v2 = vpop.f32.mrf.mxu0 }
 0x2b8   :  { %v629_v3 = vpop.eup %628 }
 0x2b9   :  { %v462_v4 = vadd.f32 1.0, %v629_v3 }
 0x2bb   :  { %630 = vrcp.f32 %v462_v4 }
 0x2c8   :  { %v631_v5 = vpop.eup %630 }
 0x2c9   :  { %465 = vst [vmem:[#allocation10] sm:$0xff] %v631_v5 }
 0x2ca   :  { %723 = shalt.err (!%p720_p10)
}
 0x2cb   :  { %475 = dma.vmem_to_hbm [thread:$0]  %s473_s26, 128, %s841_s7, [#allocation4]  }
 0x2cc   :  { %738 = dma.done.wait [#allocation4], 128  }
 0x2cd   :  { %739 = vsyncadd [#allocation4], 4294967168 }
 0x2ce   :  { %479 = vsyncpa [#allocation3], 1 }
 0x2cf   :  { %480 = vsyncpa [#allocation6], 1 }
 0x2d0   :  { %481 = vsyncpa [#allocation9], 1 }
 0x2d1   :  { %482 = vsyncpa [#allocation4], 1 }

</bundles_post_ra>
